<compile_context>
chip_gen: v7x
topology: tpu7x:2x2x1
jax: 0.10.0
libtpu: 0.0.40
codegen_flags: <defaults>
</compile_context>

<pallas_src>
import functools
import math

import jax
import jax.numpy as jnp
from jax.experimental import pallas as pl
from jax.experimental.pallas import tpu as pltpu


# --------------------------------------------------------------------------- #
# Kernel
# --------------------------------------------------------------------------- #
def _fc1_fc2_partial(x, w1_ref, b1_ref, w2_ref, mxu_bf16):
    """ReLU(x @ w1_chunk + b1_chunk) @ w2_chunk, f32 MXU accumulation."""
    if mxu_bf16:
        xa = x.astype(jnp.bfloat16)
        w1 = w1_ref[...].astype(jnp.bfloat16)
    else:
        xa = x
        w1 = w1_ref[...]
    h = jnp.dot(xa, w1, preferred_element_type=jnp.float32)
    h = jnp.maximum(h + b1_ref[...].astype(jnp.float32), 0.0)      # bias + ReLU in f32 (VPU)
    mm2_dtype = jnp.bfloat16 if mxu_bf16 else w2_ref.dtype
    return jnp.dot(h.astype(mm2_dtype), w2_ref[...].astype(mm2_dtype),
                   preferred_element_type=jnp.float32)


def _make_kernel(mxu_bf16, single_chunk):
    if single_chunk:
        # Whole hidden dim in one chunk: no accumulator scratch at all.
        def kernel(x_ref, w1_ref, b1_ref, w2_ref, b2_ref, o_ref):
            x = x_ref[...]
            p = _fc1_fc2_partial(x, w1_ref, b1_ref, w2_ref, mxu_bf16)
            y = p + b2_ref[...].astype(jnp.float32) + x.astype(jnp.float32)
            o_ref[...] = y.astype(o_ref.dtype)
        return kernel

    def kernel(x_ref, w1_ref, b1_ref, w2_ref, b2_ref, o_ref, acc_ref):
        k = pl.program_id(1)
        x = x_ref[...]
        p = _fc1_fc2_partial(x, w1_ref, b1_ref, w2_ref, mxu_bf16)

        @pl.when(k == 0)
        def _first():                     # direct write, no zero-init round trip
            acc_ref[...] = p

        @pl.when(k > 0)
        def _accum():
            acc_ref[...] += p

        @pl.when(k == pl.num_programs(1) - 1)
        def _finalize():
            y = acc_ref[...] + b2_ref[...].astype(jnp.float32) + x.astype(jnp.float32)
            o_ref[...] = y.astype(o_ref.dtype)

    return kernel


# --------------------------------------------------------------------------- #
# Chip info / helpers
# --------------------------------------------------------------------------- #
def _round_up(x, m):
    return ((x + m - 1) // m) * m


@functools.lru_cache(maxsize=1)
def _chip_info():
    """(vmem_bytes_per_tensorcore, tensorcores_per_chip, is_v7x) with safe fallbacks."""
    kind = ""
    try:
        kind = jax.devices()[0].device_kind.lower()
    except Exception:
        pass
    vmem = None
    try:
        vmem = int(pltpu.get_tpu_info().vmem_capacity_bytes)
    except Exception:
        pass
    is_v7 = ("v7" in kind) or ("7x" in kind) or (vmem is not None and vmem <= (64 << 20))
    if vmem is None:
        if ("v5" in kind) or ("v6" in kind):
            vmem = 128 << 20
        else:
            vmem = 64 << 20               # conservative default, fits every generation
    num_tc = 2 if is_v7 else 1
    return vmem, num_tc, is_v7


# --------------------------------------------------------------------------- #
# Module-like wrapper: pads weights to lane-dense shapes ONCE at construction.
# --------------------------------------------------------------------------- #
class ResidualBlockTPU:
    """Pallas-TPU ResidualBlock: out = fc2(relu(fc1(x))) + x  (dropout = identity / eval)."""

    def __init__(self, w1, b1, w2, b2, *, mxu_bf16=False, tm=None, tk=None):
        d_in, d_h = w1.shape
        assert w2.shape == (d_h, d_in) and b1.shape == (d_h,) and b2.shape == (d_in,)
        self.d_in, self.d_h = d_in, d_h
        self.d_in_p = _round_up(d_in, 128)        # lane-dense feature dims
        self.d_h_p = _round_up(d_h, 128)
        pi, ph = self.d_in_p - d_in, self.d_h_p - d_h
        if pi or ph:                              # pad ONCE, here, not per forward call
            w1 = jnp.pad(w1, ((0, pi), (0, ph)))
            b1 = jnp.pad(b1, ((0, ph),))
            w2 = jnp.pad(w2, ((0, ph), (0, pi)))
            b2 = jnp.pad(b2, ((0, pi),))
        self.w1, self.w2 = w1, w2
        self.b1 = b1.reshape(1, self.d_h_p)
        self.b2 = b2.reshape(1, self.d_in_p)
        self.mxu_bf16 = bool(mxu_bf16)
        self._tm, self._tk = tm, tk

    # ---- tile selection ---------------------------------------------------
    def _select_tiles(self, B, x_itemsize):
        vmem_bytes, num_tc, is_v7 = _chip_info()
        w_isz = jnp.dtype(self.w1.dtype).itemsize
        d_in_p, d_h_p = self.d_in_p, self.d_h_p
        sub = {4: 8, 2: 16, 1: 32}.get(x_itemsize, 8)     # sublane packing for x/out tiles

        def est(tm_, tk_):
            io = 2 * 2 * tm_ * d_in_p * x_itemsize                     # x + out, double-buffered
            wts = 2 * (2 * d_in_p * tk_ + tk_ + d_in_p) * w_isz        # w1/w2/b1/b2 chunks
            scratch = tm_ * d_in_p * 4 + tm_ * tk_ * 4                 # f32 acc + live h
            return io + wts + scratch

        budget = min(int(0.75 * vmem_bytes), 96 << 20)    # 96 MiB on v5e/v6e, 48 MiB on v7x

        tm = self._tm
        if tm is None:
            tm_target = 256 if (is_v7 or B < 512) else 512   # bigger M tiles on 128-MiB chips
            if B <= tm_target:
                if num_tc >= 2 and B > sub:
                    tm = max(sub, _round_up(pl.cdiv(B, 2), sub))   # feed both v7x TensorCores
                else:
                    tm = max(sub, _round_up(B, sub))               # single TC: one big tile
            else:
                tm = tm_target
        tm = max(sub, _round_up(tm, sub))

        tk = self._tk
        if tk is None:
            if est(tm, d_h_p) <= budget:
                tk = d_h_p            # weights fully VMEM-resident: DMA'd once for whole grid
            else:
                tk = 128              # stream: largest 128-aligned divisor of d_h_p that fits
                t = 256
                while t <= min(d_h_p, 1024):
                    if d_h_p % t == 0 and est(tm, t) <= budget:
                        tk = t
                    t += 128
        else:
            tk = min(_round_up(tk, 128), d_h_p)
            while d_h_p % tk != 0:    # must divide the padded hidden dim (128 always does)
                tk -= 128
            tk = max(tk, 128)

        while est(tm, tk) > budget and tm > sub:             # last-resort shrink
            tm = max(sub, _round_up(tm // 2, sub))

        vmem_limit = int(min(max(int(1.25 * est(tm, tk)), 32 << 20), int(0.8 * vmem_bytes)))
        return tm, tk, vmem_limit

    # ---- forward ------------------------------------------------------------
    def __call__(self, x):
        orig_shape = x.shape
        assert orig_shape[-1] == self.d_in, "last dim of x must equal input_dim"
        x2 = x.reshape(-1, self.d_in)
        B = x2.shape[0]
        x_isz = jnp.dtype(x2.dtype).itemsize

        tm, tk, vmem_limit = self._select_tiles(B, x_isz)
        d_in_p, d_h_p = self.d_in_p, self.d_h_p

        Bp = _round_up(B, tm)
        pad_rows, pad_cols = Bp - B, d_in_p - self.d_in
        if pad_rows or pad_cols:                      # only the activation is padded per call
            x2 = jnp.pad(x2, ((0, pad_rows), (0, pad_cols)))

        n_k = d_h_p // tk
        grid = (Bp // tm, n_k)
        single_chunk = n_k == 1
        kernel = _make_kernel(self.mxu_bf16, single_chunk)
        scratch = [] if single_chunk else [pltpu.VMEM((tm, d_in_p), jnp.float32)]

        out = pl.pallas_call(
            kernel,
            out_shape=jax.ShapeDtypeStruct((Bp, d_in_p), x.dtype),
            grid_spec=pltpu.PrefetchScalarGridSpec(
                num_scalar_prefetch=0,
                grid=grid,
                in_specs=[
                    pl.BlockSpec((tm, d_in_p), lambda i, k: (i, 0)),   # x batch tile
                    pl.BlockSpec((d_in_p, tk), lambda i, k: (0, k)),   # w1 chunk (const if n_k==1)
                    pl.BlockSpec((1, tk),      lambda i, k: (0, k)),   # b1 chunk
                    pl.BlockSpec((tk, d_in_p), lambda i, k: (k, 0)),   # w2 chunk
                    pl.BlockSpec((1, d_in_p),  lambda i, k: (0, 0)),   # b2
                ],
                out_specs=pl.BlockSpec((tm, d_in_p), lambda i, k: (i, 0)),
                scratch_shapes=scratch,
            ),
            compiler_params=pltpu.CompilerParams(
                dimension_semantics=("parallel", "arbitrary"),
                vmem_limit_bytes=vmem_limit,
            ),
        )(x2, self.w1, self.b1, self.w2, self.b2)

        if pad_rows or pad_cols:
            out = out[:B, : self.d_in]
        return out.reshape(orig_shape)


def residual_block(x, w1, b1, w2, b2, **kw):
    """One-shot convenience wrapper. For repeated calls, build ResidualBlockTPU once
    so the weight padding happens a single time."""
    return ResidualBlockTPU(w1, b1, w2, b2, **kw)(x)


# --------------------------------------------------------------------------- #
# Params / reference
# --------------------------------------------------------------------------- #
def init_params(key, input_dim, hidden_dim, dtype=jnp.float32):
    """Deterministic init mimicking nn.Linear defaults (uniform +-1/sqrt(fan_in))."""
    k1, k2, k3, k4 = jax.random.split(key, 4)
    bound1 = 1.0 / math.sqrt(input_dim)
    bound2 = 1.0 / math.sqrt(hidden_dim)
    # Stored already transposed to [in, out] for x @ W.
    w1 = jax.random.uniform(k1, (input_dim, hidden_dim), dtype, -bound1, bound1)
    b1 = jax.random.uniform(k2, (hidden_dim,), dtype, -bound1, bound1)
    w2 = jax.random.uniform(k3, (hidden_dim, input_dim), dtype, -bound2, bound2)
    b2 = jax.random.uniform(k4, (input_dim,), dtype, -bound2, bound2)
    return w1, b1, w2, b2


def reference(x, w1, b1, w2, b2):
    h = jnp.maximum(x @ w1 + b1, 0.0)
    return h @ w2 + b2 + x


# --------------------------------------------------------------------------- #
# Demo / tests
# --------------------------------------------------------------------------- #
if __name__ == "__main__":
    key = jax.random.PRNGKey(0)
    kx, kp, kx2, kp2 = jax.random.split(key, 4)

    # Small, lane-dense shapes (feature dims multiples of 128).
    B, INPUT_DIM, HIDDEN_DIM = 64, 128, 256
    x = jax.random.normal(kx, (B, INPUT_DIM), dtype=jnp.float32)
    w1, b1, w2, b2 = init_params(kp, INPUT_DIM, HIDDEN_DIM)

    block = ResidualBlockTPU(w1, b1, w2, b2)          # weights prepared once here
    out = jax.block_until_ready(block(x))
    ref = reference(x, w1, b1, w2, b2)
    assert out.shape == x.shape
    assert jnp.allclose(out, ref, atol=1e-3, rtol=1e-3), "f32 mismatch vs reference"

    # Awkward (non-128-multiple) dims exercise the pad-once / ragged path.
    xa = jax.random.normal(kx2, (37, 96), dtype=jnp.float32)
    wa1, ba1, wa2, ba2 = init_params(kp2, 96, 200)
    blocka = ResidualBlockTPU(wa1, ba1, wa2, ba2)
    outa = jax.block_until_ready(blocka(xa))
    refa = reference(xa, wa1, ba1, wa2, ba2)
    assert outa.shape == xa.shape
    assert jnp.allclose(outa, refa, atol=1e-3, rtol=1e-3), "padded-path mismatch"

    # bf16 weight/activation path (f32 MXU accumulation + f32 VPU epilogue).
    xb = x.astype(jnp.bfloat16)
    blockb = ResidualBlockTPU(w1.astype(jnp.bfloat16), b1.astype(jnp.bfloat16),
                              w2.astype(jnp.bfloat16), b2.astype(jnp.bfloat16))
    outb = jax.block_until_ready(blockb(xb))
    refb = reference(xb.astype(jnp.float32), w1.astype(jnp.bfloat16).astype(jnp.float32),
                     b1.astype(jnp.bfloat16).astype(jnp.float32),
                     w2.astype(jnp.bfloat16).astype(jnp.float32),
                     b2.astype(jnp.bfloat16).astype(jnp.float32))
    assert outb.dtype == jnp.bfloat16
    assert jnp.allclose(outb.astype(jnp.float32), refb, atol=3e-2, rtol=3e-2), \
        "bf16 mismatch vs reference"

    print("KERNEL_OK")
</pallas_src>

<mosaic_0001>
module attributes {stable_mosaic.version = 11 : i64} {
  func.func @kernel(%arg0: i32, %arg1: i32, %arg2: memref<64x128xf32, #tpu.memory_space<vmem>>, %arg3: memref<128x256xf32, #tpu.memory_space<vmem>>, %arg4: memref<1x256xf32, #tpu.memory_space<vmem>>, %arg5: memref<256x128xf32, #tpu.memory_space<vmem>>, %arg6: memref<1x128xf32, #tpu.memory_space<vmem>>, %arg7: memref<64x128xf32, #tpu.memory_space<vmem>>) attributes {dimension_semantics = [#tpu.dimension_semantics<parallel>, #tpu.dimension_semantics<arbitrary>], iteration_bounds = array<i64: 1, 1>, scalar_prefetch = 0 : i64, scratch_operands = 0 : i64, tpu.core_type = #tpu.core_type<tc>, window_params = [{transform_indices = @transform_0, window_bounds = array<i64: 64, 128>}, {transform_indices = @transform_1, window_bounds = array<i64: 128, 256>}, {transform_indices = @transform_2, window_bounds = array<i64: 1, 256>}, {transform_indices = @transform_3, window_bounds = array<i64: 256, 128>}, {pipeline_mode = #tpu.pipeline_mode<synchronous>, transform_indices = @transform_4, window_bounds = array<i64: 1, 128>}, {transform_indices = @transform_5, window_bounds = array<i64: 64, 128>}]} {
    %c0 = arith.constant 0 : index
    %c0_0 = arith.constant 0 : index
    %0 = vector.load %arg2[%c0, %c0_0] : memref<64x128xf32, #tpu.memory_space<vmem>>, vector<64x128xf32>
    %c0_1 = arith.constant 0 : index
    %c0_2 = arith.constant 0 : index
    %1 = vector.load %arg3[%c0_1, %c0_2] : memref<128x256xf32, #tpu.memory_space<vmem>>, vector<128x256xf32>
    %cst = arith.constant dense<0.000000e+00> : vector<64x256xf32>
    %2 = tpu.matmul %0, %1, %cst {dimension_numbers = #tpu.dot_dimension_numbers<[1], [0], [0], [1], [0, 0, 1, 1], [], []>} : vector<64x128xf32>, vector<128x256xf32>, vector<64x256xf32> -> vector<64x256xf32>
    %c0_3 = arith.constant 0 : index
    %c0_4 = arith.constant 0 : index
    %3 = vector.load %arg4[%c0_3, %c0_4] : memref<1x256xf32, #tpu.memory_space<vmem>>, vector<1x256xf32>
    %4 = vector.broadcast %3 : vector<1x256xf32> to vector<64x256xf32>
    %5 = arith.addf %2, %4 : vector<64x256xf32>
    %cst_5 = arith.constant 0.000000e+00 : f32
    %6 = vector.broadcast %cst_5 : f32 to vector<64x256xf32>
    %7 = arith.maximumf %5, %6 : vector<64x256xf32>
    %c0_6 = arith.constant 0 : index
    %c0_7 = arith.constant 0 : index
    %8 = vector.load %arg5[%c0_6, %c0_7] : memref<256x128xf32, #tpu.memory_space<vmem>>, vector<256x128xf32>
    %cst_8 = arith.constant dense<0.000000e+00> : vector<64x128xf32>
    %9 = tpu.matmul %7, %8, %cst_8 {dimension_numbers = #tpu.dot_dimension_numbers<[1], [0], [0], [1], [0, 0, 1, 1], [], []>} : vector<64x256xf32>, vector<256x128xf32>, vector<64x128xf32> -> vector<64x128xf32>
    %c0_9 = arith.constant 0 : index
    %c0_10 = arith.constant 0 : index
    %10 = vector.load %arg6[%c0_9, %c0_10] : memref<1x128xf32, #tpu.memory_space<vmem>>, vector<1x128xf32>
    %11 = vector.broadcast %10 : vector<1x128xf32> to vector<64x128xf32>
    %12 = arith.addf %9, %11 : vector<64x128xf32>
    %13 = arith.addf %12, %0 : vector<64x128xf32>
    %c0_11 = arith.constant 0 : index
    %c0_12 = arith.constant 0 : index
    %14 = vector.load %arg7[%c0_11, %c0_12] : memref<64x128xf32, #tpu.memory_space<vmem>>, vector<64x128xf32>
    tpu.vector_store %arg7[%c0_11, %c0_12], %13 {strides = array<i32>} : memref<64x128xf32, #tpu.memory_space<vmem>>, vector<64x128xf32>,
    return
  }
  func.func @transform_0(%arg0: i32, %arg1: i32) -> (i32, i32) {
    %c0_i32 = arith.constant 0 : i32
    %c0_i32_0 = arith.constant 0 : i32
    return %arg0, %c0_i32 : i32, i32
  }
  func.func @transform_1(%arg0: i32, %arg1: i32) -> (i32, i32) {
    %c0_i32 = arith.constant 0 : i32
    %c0_i32_0 = arith.constant 0 : i32
    return %c0_i32, %arg1 : i32, i32
  }
  func.func @transform_2(%arg0: i32, %arg1: i32) -> (i32, i32) {
    %c0_i32 = arith.constant 0 : i32
    %c0_i32_0 = arith.constant 0 : i32
    return %c0_i32, %arg1 : i32, i32
  }
  func.func @transform_3(%arg0: i32, %arg1: i32) -> (i32, i32) {
    %c0_i32 = arith.constant 0 : i32
    %c0_i32_0 = arith.constant 0 : i32
    return %arg1, %c0_i32 : i32, i32
  }
  func.func @transform_4(%arg0: i32, %arg1: i32) -> (i32, i32) {
    %c0_i32 = arith.constant 0 : i32
    %c0_i32_0 = arith.constant 0 : i32
    %c0_i32_1 = arith.constant 0 : i32
    return %c0_i32, %c0_i32_0 : i32, i32
  }
  func.func @transform_5(%arg0: i32, %arg1: i32) -> (i32, i32) {
    %c0_i32 = arith.constant 0 : i32
    %c0_i32_0 = arith.constant 0 : i32
    return %arg0, %c0_i32 : i32, i32
  }
}

</mosaic_0001>

<bundles_post_ra>
// kernel: tpu_custom_call.1
= control target key start
LH: loop header
LB: loop body
LE: loop exit
PB: predicated region body
PF: predicated region fallthrough
CT: control target
= control target key end

     0   :  { %10 = vsyncpa [#allocation3], 0  ;;  %s787_s0 = inlined_call_operand.hbm [shape: f32[64,128], index: 0, kind: input, shape index: {}]   ;;  %s788_s1 = inlined_call_operand.hbm [shape: f32[128,256], index: 1, kind: input, shape index: {}]   ;;  %s789_s2 = inlined_call_operand.vmem [shape: f32[1,256], index: 2, kind: input, shape index: {}]   ;;  %s790_s3 = inlined_call_operand.hbm [shape: f32[256,128], index: 3, kind: input, shape index: {}]   ;;  %s791_s4 = inlined_call_operand.vmem [shape: f32[1,128], index: 4, kind: input, shape index: {}]   ;;  %s792_s5 = inlined_call_operand.hbm [shape: f32[64,128], index: 5, kind: output, shape index: {}]  }
   0x1   :  { %11 = vsyncpa [#allocation6], 0 }
   0x2   :  { %12 = vsyncpa [#allocation4], 0  ;;  %s645_s18 = smov [#allocation5]   ;;  %s551_s22 = scalar_lea.hbm %s788_s1, 4096 }
   0x3   :  { %s30_s19 = sshll.u32 %s645_s18, 4  ;;  %p552_p0 = scmp.ne.s32.totalorder %s788_s1, %s551_s22  ;;  %s31_s19 = int_to_ptr.vmem [resolvable:$true] %s30_s19 }
   0x4   :  { %p555_p1 = scmp.lt.u32.totalorder %s551_s22, %s788_s1 }
   0x6   :  { %p557_p2 = pnand %p555_p1, %p552_p0 }
   0x8   :  { %560 = shalt.err (!%p557_p2)
}
   0x9   :  { %s561_s27 = scalar_lea.vmem %s31_s19, 4096  ;;  %p566_p4 = scmp.lt.s32.totalorder %s31_s19, %s31_s19 }
   0xa   :  { %p562_p3 = scmp.ne.s32.totalorder %s31_s19, %s561_s27  ;;  %p567_p5 = scmp.lt.s32.totalorder %s561_s27, %s561_s27 }
   0xc   :  { %p568_p6 = por %p567_p5, %p566_p4 }
   0xe   :  { %p569_p7 = pnand %p568_p6, %p562_p3 }
  0x10   :  { %572 = shalt.err (!%p569_p7)
}
  0x11   :  { %s646_s28 = smov 256   ;;  %s647_s29 = smov 16  }
  0x12   :  { %36 = dma.hbm_to_vmem [thread:$0]  %s788_s1, 4096, %s31_s19, [#allocation6], %s646_s28, %s646_s28, %s647_s29  }
  0x13   :  { %s648_s7 = smov [#allocation2]   ;;  %s573_s11 = scalar_lea.hbm %s787_s0, 1024 }
  0x14   :  { %s18_s8 = sshll.u32 %s648_s7, 4  ;;  %p574_p8 = scmp.ne.s32.totalorder %s787_s0, %s573_s11  ;;  %s19_s8 = int_to_ptr.vmem [resolvable:$true] %s18_s8 }
  0x15   :  { %p577_p9 = scmp.lt.u32.totalorder %s573_s11, %s787_s0 }
  0x17   :  { %p579_p10 = pnand %p577_p9, %p574_p8 }
  0x19   :  { %582 = shalt.err (!%p579_p10)
}
  0x1a   :  { %s583_s16 = scalar_lea.vmem %s19_s8, 1024  ;;  %p588_p12 = scmp.lt.s32.totalorder %s19_s8, %s19_s8 }
  0x1b   :  { %p584_p11 = scmp.ne.s32.totalorder %s19_s8, %s583_s16  ;;  %p589_p13 = scmp.lt.s32.totalorder %s583_s16, %s583_s16 }
  0x1d   :  { %p590_p0 = por %p589_p13, %p588_p12 }
  0x1f   :  { %p591_p1 = pnand %p590_p0, %p584_p11 }
  0x21   :  { %594 = shalt.err (!%p591_p1)
}
  0x22   :  { %s649_s1 = smov 128   ;;  %s650_s17 = smov 8  }
  0x23   :  { %24 = dma.hbm_to_vmem [thread:$0]  %s787_s0, 1024, %s19_s8, [#allocation3], %s649_s1, %s649_s1, %s650_s17  }
  0x24   :  { %s651_s20 = smov [#allocation7]   ;;  %s595_s24 = scalar_lea.hbm %s790_s3, 4096 }
  0x25   :  { %s44_s21 = sshll.u32 %s651_s20, 4  ;;  %p596_p2 = scmp.ne.s32.totalorder %s790_s3, %s595_s24  ;;  %s45_s21 = int_to_ptr.vmem [resolvable:$true] %s44_s21 }
  0x26   :  { %p599_p3 = scmp.lt.u32.totalorder %s595_s24, %s790_s3 }
  0x28   :  { %p601_p4 = pnand %p599_p3, %p596_p2 }
  0x2a   :  { %604 = shalt.err (!%p601_p4)
}
  0x2b   :  { %s605_s29 = scalar_lea.vmem %s45_s21, 4096  ;;  %p610_p6 = scmp.lt.s32.totalorder %s45_s21, %s45_s21 }
  0x2c   :  { %p606_p5 = scmp.ne.s32.totalorder %s45_s21, %s605_s29  ;;  %p611_p7 = scmp.lt.s32.totalorder %s605_s29, %s605_s29 }
  0x2e   :  { %p612_p8 = por %p611_p7, %p610_p6 }
  0x30   :  { %p613_p9 = pnand %p612_p8, %p606_p5 }
  0x32   :  { %616 = shalt.err (!%p613_p9)
}
  0x33   :  { %50 = dma.hbm_to_vmem [thread:$0]  %s790_s3, 4096, %s45_s21, [#allocation6], %s649_s1, %s649_s1, %s650_s17  }
  0x34   :  { %639 = dma.done.wait [#allocation3], 1024  }
  0x35   :  { %640 = vsyncadd [#allocation3], 4294966272 }
  0x36   :  { %641 = dma.done.wait [#allocation6], 8192  }
  0x37   :  { %642 = vsyncadd [#allocation6], 4294959104  ;;  %v652_v0 = vmov 0.0   ;;  %v71_v1 = vld [vmem:[#allocation5 + $0x8] sm:$0xff]  ;;  %v73_v2 = vld [vmem:[#allocation5 + $0x18] sm:$0xff] }
  0x38   :  { %178 = vmatprep.mubr.f32.mxu0 %v652_v0  ;;  %v70_v3 = vld [vmem:[#allocation5] sm:$0xff]  ;;  %v478_v4 = vpack.c.bf16 %v73_v2, %v71_v1  ;;  %v72_v5 = vld [vmem:[#allocation5 + $0x10] sm:$0xff]  ;;  %v75_v6 = vld [vmem:[#allocation5 + $0x28] sm:$0xff] }
  0x39   :  { %v77_v7 = vld [vmem:[#allocation5 + $0x38] sm:$0xff]  ;;  %v480_v8 = vpack.c.bf16 %v72_v5, %v70_v3  ;;  %v74_v10 = vld [vmem:[#allocation5 + $0x20] sm:$0xff]  ;;  %v76_v11 = vld [vmem:[#allocation5 + $0x30] sm:$0xff] }
  0x3a   :  { %v482_v9 = vpack.c.bf16 %v77_v7, %v75_v6  ;;  %v79_v12 = vld [vmem:[#allocation5 + $0x48] sm:$0xff]  ;;  %479 = vmatprep.subr.bf16.mxu0 %v478_v4  ;;  %v81_v13 = vld [vmem:[#allocation5 + $0x58] sm:$0xff]  ;;  %v484_v14 = vpack.c.bf16 %v76_v11, %v74_v10  ;;  %v78_v16 = vld [vmem:[#allocation5 + $0x40] sm:$0xff] }
  0x3b   :  { %481 = vmatpush1.bf16.msra.mxu0 %v480_v8  ;;  %v486_v15 = vpack.c.bf16 %v81_v13, %v79_v12  ;;  %v80_v17 = vld [vmem:[#allocation5 + $0x50] sm:$0xff]  ;;  %v83_v18 = vld [vmem:[#allocation5 + $0x68] sm:$0xff]  ;;  %v85_v19 = vld [vmem:[#allocation5 + $0x78] sm:$0xff] }
  0x3c   :  { %483 = vmatprep.subr.bf16.mxu0 %v482_v9  ;;  %v488_v20 = vpack.c.bf16 %v80_v17, %v78_v16  ;;  %v490_v21 = vpack.c.bf16 %v85_v19, %v83_v18  ;;  %v82_v22 = vld [vmem:[#allocation5 + $0x60] sm:$0xff]  ;;  %v84_v23 = vld [vmem:[#allocation5 + $0x70] sm:$0xff]  ;;  %v87_v24 = vld [vmem:[#allocation5 + $0x88] sm:$0xff] }
  0x3d   :  { %v89_v25 = vld [vmem:[#allocation5 + $0x98] sm:$0xff]  ;;  %v492_v26 = vpack.c.bf16 %v84_v23, %v82_v22  ;;  %v86_v27 = vld [vmem:[#allocation5 + $0x80] sm:$0xff]  ;;  %v88_v28 = vld [vmem:[#allocation5 + $0x90] sm:$0xff] }
  0x3e   :  { %v91_v29 = vld [vmem:[#allocation5 + $0xa8] sm:$0xff]  ;;  %v494_v30 = vpack.c.bf16 %v89_v25, %v87_v24  ;;  %v93_v31 = vld [vmem:[#allocation5 + $0xb8] sm:$0xff]  ;;  %v259_v32 = vld [vmem:[#allocation7 + $0x80] sm:$0xff]  ;;  %v496_v42 = vpack.c.bf16 %v88_v28, %v86_v27 }
  0x3f   :  { %485 = vmatpush1.bf16.msra.mxu0 %v484_v14  ;;  %v260_v33 = vld [vmem:[#allocation7 + $0x88] sm:$0xff]  ;;  %v243_v35 = vld [vmem:[#allocation7] sm:$0xff]  ;;  %v261_v37 = vld [vmem:[#allocation7 + $0x90] sm:$0xff]  ;;  %v498_v46 = vpack.c.bf16 %v93_v31, %v91_v29 }
  0x40   :  { %487 = vmatprep.subr.bf16.mxu0 %v486_v15  ;;  %v510_v34 = vpack.c.bf16 %v260_v33, %v259_v32  ;;  %v244_v36 = vld [vmem:[#allocation7 + $0x8] sm:$0xff]  ;;  %v262_v39 = vld [vmem:[#allocation7 + $0x98] sm:$0xff]  ;;  %v245_v40 = vld [vmem:[#allocation7 + $0x10] sm:$0xff] }
  0x41   :  { %v512_v38 = vpack.c.bf16 %v244_v36, %v243_v35  ;;  %v246_v41 = vld [vmem:[#allocation7 + $0x18] sm:$0xff]  ;;  %v514_v43 = vpack.c.bf16 %v262_v39, %v261_v37  ;;  %v263_v44 = vld [vmem:[#allocation7 + $0xa0] sm:$0xff]  ;;  %v264_v45 = vld [vmem:[#allocation7 + $0xa8] sm:$0xff] }
  0x42   :  { %511 = vmatprep.subr.bf16.mxu1 %v510_v34  ;;  %v90_v47 = vld [vmem:[#allocation5 + $0xa0] sm:$0xff]  ;;  %v92_v48 = vld [vmem:[#allocation5 + $0xb0] sm:$0xff]  ;;  %v95_v49 = vld [vmem:[#allocation5 + $0xc8] sm:$0xff]  ;;  %v516_v50 = vpack.c.bf16 %v246_v41, %v245_v40  ;;  %v518_v52 = vpack.c.bf16 %v264_v45, %v263_v44 }
  0x43   :  { %489 = vmatpush1.bf16.msra.mxu0 %v488_v20  ;;  %513 = vmatpush3.bf16.msra.mxu1 %v512_v38  ;;  %v97_v51 = vld [vmem:[#allocation5 + $0xd8] sm:$0xff]  ;;  %v247_v53 = vld [vmem:[#allocation7 + $0x20] sm:$0xff]  ;;  %v248_v54 = vld [vmem:[#allocation7 + $0x28] sm:$0xff]  ;;  %v500_v57 = vpack.c.bf16 %v92_v48, %v90_v47 }
  0x44   :  { %491 = vmatprep.subr.bf16.mxu0 %v490_v21  ;;  %515 = vmatprep.subr.bf16.mxu1 %v514_v43  ;;  %v265_v55 = vld [vmem:[#allocation7 + $0xb0] sm:$0xff]  ;;  %v266_v56 = vld [vmem:[#allocation7 + $0xb8] sm:$0xff]  ;;  %v502_v58 = vpack.c.bf16 %v97_v51, %v95_v49  ;;  %v94_v59 = vld [vmem:[#allocation5 + $0xc0] sm:$0xff]  ;;  %v520_v62 = vpack.c.bf16 %v248_v54, %v247_v53 }
  0x45   :  { %v96_v60 = vld [vmem:[#allocation5 + $0xd0] sm:$0xff]  ;;  %v99_v61 = vld [vmem:[#allocation5 + $0xe8] sm:$0xff]  ;;  %v101_v63 = vld [vmem:[#allocation5 + $0xf8] sm:$0xff]  ;;  %v522_v1 = vpack.c.bf16 %v266_v56, %v265_v55 }
  0x46   :  { %v249_v2 = vld [vmem:[#allocation7 + $0x30] sm:$0xff]  ;;  %v250_v3 = vld [vmem:[#allocation7 + $0x38] sm:$0xff]  ;;  %v267_v4 = vld [vmem:[#allocation7 + $0xc0] sm:$0xff]  ;;  %v504_v6 = vpack.c.bf16 %v96_v60, %v94_v59  ;;  %v506_v7 = vpack.c.bf16 %v101_v63, %v99_v61 }
  0x47   :  { %493 = vmatpush1.bf16.msra.mxu0 %v492_v26  ;;  %517 = vmatpush3.bf16.msra.mxu1 %v516_v50  ;;  %v268_v5 = vld [vmem:[#allocation7 + $0xc8] sm:$0xff]  ;;  %v98_v8 = vld [vmem:[#allocation5 + $0xe0] sm:$0xff]  ;;  %v100_v9 = vld [vmem:[#allocation5 + $0xf0] sm:$0xff]  ;;  %v524_v10 = vpack.c.bf16 %v250_v3, %v249_v2 }
  0x48   :  { %495 = vmatprep.subr.bf16.mxu0 %v494_v30  ;;  %519 = vmatprep.subr.bf16.mxu1 %v518_v52  ;;  %v526_v11 = vpack.c.bf16 %v268_v5, %v267_v4  ;;  %v251_v12 = vld [vmem:[#allocation7 + $0x40] sm:$0xff]  ;;  %v252_v13 = vld [vmem:[#allocation7 + $0x48] sm:$0xff]  ;;  %v269_v14 = vld [vmem:[#allocation7 + $0xd0] sm:$0xff]  ;;  %v508_v16 = vpack.c.bf16 %v100_v9, %v98_v8 }
  0x49   :  { %v270_v15 = vld [vmem:[#allocation7 + $0xd8] sm:$0xff]  ;;  %v528_v17 = vpack.c.bf16 %v252_v13, %v251_v12  ;;  %v253_v19 = vld [vmem:[#allocation7 + $0x50] sm:$0xff]  ;;  %v271_v21 = vld [vmem:[#allocation7 + $0xe0] sm:$0xff] }
  0x4a   :  { %v530_v18 = vpack.c.bf16 %v270_v15, %v269_v14  ;;  %v254_v20 = vld [vmem:[#allocation7 + $0x58] sm:$0xff]  ;;  %v272_v22 = vld [vmem:[#allocation7 + $0xe8] sm:$0xff]  ;;  %v727_v23 = vld [vmem:[#allocation2] sm:$0xff] }
  0x4b   :  { %497 = vmatpush1.bf16.msra.mxu0 %v496_v42  ;;  %521 = vmatpush3.bf16.msra.mxu1 %v520_v62  ;;  %v532_v24 = vpack.c.bf16 %v254_v20, %v253_v19  ;;  %v534_v25 = vpack.c.bf16 %v272_v22, %v271_v21  ;;  %v731_v26 = vld [vmem:[#allocation2 + $0x8] sm:$0xff]  ;;  %v735_v27 = vld [vmem:[#allocation2 + $0x10] sm:$0xff]  ;;  %v739_v28 = vld [vmem:[#allocation2 + $0x18] sm:$0xff]  ;;  %v104_v42 = vlaneseq }
  0x4c   :  { %499 = vmatprep.subr.bf16.mxu0 %v498_v46  ;;  %523 = vmatprep.subr.bf16.mxu1 %v522_v1  ;;  %v743_v29 = vld [vmem:[#allocation2 + $0x20] sm:$0xff]  ;;  %v747_v30 = vld [vmem:[#allocation2 + $0x28] sm:$0xff]  ;;  %v751_v31 = vld [vmem:[#allocation2 + $0x30] sm:$0xff] }
  0x4d   :  { %v755_v32 = vld [vmem:[#allocation2 + $0x38] sm:$0xff]  ;;  %v255_v33 = vld [vmem:[#allocation7 + $0x60] sm:$0xff]  ;;  %v256_v34 = vld [vmem:[#allocation7 + $0x68] sm:$0xff]  ;;  %v105_v43 = vshrl.u32 %v104_v42, 7 }
  0x4e   :  { %v536_v35 = vpack.c.bf16 %v256_v34, %v255_v33  ;;  %v273_v36 = vld [vmem:[#allocation7 + $0xf0] sm:$0xff]  ;;  %v274_v37 = vld [vmem:[#allocation7 + $0xf8] sm:$0xff]  ;;  %v421_v42 = vld [vmem:[%s791_s4] ss:$0 sm:$0xff]  ;;  %s653_s4 = smov [#allocation8]  }
  0x4f   :  { %501 = vmatpush1.bf16.msra.mxu0 %v500_v57  ;;  %525 = vmatpush3.bf16.msra.mxu1 %v524_v10  ;;  %v538_v38 = vpack.c.bf16 %v274_v37, %v273_v36  ;;  %v257_v39 = vld [vmem:[#allocation7 + $0x70] sm:$0xff]  ;;  %v258_v40 = vld [vmem:[#allocation7 + $0x78] sm:$0xff]  ;;  %v106_v44 = vsub.s32 0, %v105_v43  ;;  %v110_v45 = vsub.s32 1, %v105_v43  ;;  %s408_s8 = sshll.u32 %s653_s4, 4  ;;  %s409_s8 = int_to_ptr.vmem [resolvable:$true] %s408_s8 }
  0x50   :  { %503 = vmatprep.subr.bf16.mxu0 %v502_v58  ;;  %527 = vmatprep.subr.bf16.mxu1 %v526_v11  ;;  %v540_v41 = vpack.c.bf16 %v258_v40, %v257_v39  ;;  %s617_s9 = scalar_lea.vmem %s409_s8, 1024  ;;  %p622_p11 = scmp.lt.s32.totalorder %s409_s8, %s409_s8 }
  0x51   :  { %p618_p10 = scmp.ne.s32.totalorder %s409_s8, %s617_s9  ;;  %p623_p12 = scmp.lt.s32.totalorder %s617_s9, %s617_s9 }
  0x53   :  { %505 = vmatpush1.bf16.msra.mxu0 %v504_v6  ;;  %529 = vmatpush3.bf16.msra.mxu1 %v528_v17  ;;  %p624_p13 = por %p623_p12, %p622_p11 }
  0x54   :  { %507 = vmatprep.subr.bf16.mxu0 %v506_v7  ;;  %531 = vmatprep.subr.bf16.mxu1 %v530_v18 }
  0x55   :  { %p625_p0 = pnand %p624_p13, %p618_p10 }
  0x57   :  { %509 = vmatpush1.bf16.msra.mxu0 %v508_v16  ;;  %533 = vmatpush3.bf16.msra.mxu1 %v532_v24 }
  0x58   :  { %535 = vmatprep.subr.bf16.mxu1 %v534_v25 }
  0x5a   :  { %179 = vmatmul.mubr.f32.vlgmr.msra.gmra.mrb[0].mxu0 %v727_v23 }
  0x5b   :  { %184 = vmatprep.mubr.f32.mxu0 %v652_v0  ;;  %537 = vmatpush3.bf16.msra.mxu1 %v536_v35 }
  0x5c   :  { %539 = vmatprep.subr.bf16.mxu1 %v538_v38 }
  0x5e   :  { %185 = vmatmul.mubr.f32.gmra.mrb[2].mxu0 %v731_v26 }
  0x5f   :  { %190 = vmatprep.mubr.f32.mxu0 %v652_v0  ;;  %541 = vmatpush3.bf16.msra.mxu1 %v540_v41 }
  0x62   :  { %191 = vmatmul.mubr.f32.gmra.mrb[4].mxu0 %v735_v27 }
  0x63   :  { %196 = vmatprep.mubr.f32.mxu0 %v652_v0 }
  0x66   :  { %197 = vmatmul.mubr.f32.gmra.mrb[6].mxu0 %v739_v28 }
  0x67   :  { %202 = vmatprep.mubr.f32.mxu0 %v652_v0 }
  0x6a   :  { %203 = vmatmul.mubr.f32.gmra.mrb[8].mxu0 %v743_v29 }
  0x6b   :  { %208 = vmatprep.mubr.f32.mxu0 %v652_v0 }
  0x6e   :  { %209 = vmatmul.mubr.f32.gmra.mrb[10].mxu0 %v747_v30 }
  0x6f   :  { %214 = vmatprep.mubr.f32.mxu0 %v652_v0 }
  0x72   :  { %215 = vmatmul.mubr.f32.gmra.mrb[12].mxu0 %v751_v31 }
  0x73   :  { %220 = vmatprep.mubr.f32.mxu0 %v652_v0  ;;  %v102_v0 = vld [vmem:[%s789_s2] sm:$0x3] }
  0x74   :  { %v107_v46 = vrot.slane %v102_v0, %v106_v44  ;;  %v111_v47 = vrot.slane %v102_v0, %v110_v45 }
  0x76   :  { %221 = vmatmul.mubr.f32.gmra.mrb[14].mxu0 %v755_v32 }
 0x12d   :  { %v180_v48 = vpop.f32.mrb[0].mxu0 }
 0x12e   :  { %v181_v49 = vadd.f32 %v180_v48, %v107_v46  ;;  %v182_v50 = vpop.f32.mrb[1].mxu0 }
 0x12f   :  { %v183_v51 = vadd.f32 %v182_v50, %v111_v47 }
 0x130   :  { %v227_v54 = vmax.f32 %v181_v49, 0.0 }
 0x131   :  { %v186_v52 = vpop.f32.mrb[2].mxu0  ;;  %v228_v53 = vmax.f32 %v183_v51, 0.0 }
 0x132   :  { %v187_v55 = vadd.f32 %v186_v52, %v107_v46  ;;  %v188_v56 = vpop.f32.mrb[3].mxu0 }
 0x133   :  { %v189_v57 = vadd.f32 %v188_v56, %v111_v47  ;;  %346 = vmatprep.mubr.f32.mxu1 %v228_v53 }
 0x134   :  { %347 = vmatmul.mubr.f32.vlgmr.msra.gmra.mrb[0].mxu1 %v227_v54  ;;  %v229_v60 = vmax.f32 %v187_v55, 0.0 }
 0x135   :  { %v230_v58 = vmax.f32 %v189_v57, 0.0  ;;  %v192_v59 = vpop.f32.mrb[4].mxu0 }
 0x136   :  { %v193_v61 = vadd.f32 %v192_v59, %v107_v46  ;;  %v194_v62 = vpop.f32.mrb[5].mxu0 }
 0x137   :  { %v195_v63 = vadd.f32 %v194_v62, %v111_v47  ;;  %351 = vmatprep.mubr.f32.mxu1 %v230_v58 }
 0x138   :  { %352 = vmatmul.mubr.f32.gmra.mrb[2].mxu1 %v229_v60  ;;  %v231_v3 = vmax.f32 %v193_v61, 0.0 }
 0x139   :  { %v232_v1 = vmax.f32 %v195_v63, 0.0  ;;  %v198_v2 = vpop.f32.mrb[6].mxu0 }
 0x13a   :  { %v199_v4 = vadd.f32 %v198_v2, %v107_v46  ;;  %v200_v5 = vpop.f32.mrb[7].mxu0 }
 0x13b   :  { %v201_v6 = vadd.f32 %v200_v5, %v111_v47  ;;  %356 = vmatprep.mubr.f32.mxu1 %v232_v1 }
 0x13c   :  { %357 = vmatmul.mubr.f32.gmra.mrb[4].mxu1 %v231_v3  ;;  %v233_v9 = vmax.f32 %v199_v4, 0.0 }
 0x13d   :  { %v234_v7 = vmax.f32 %v201_v6, 0.0  ;;  %v204_v8 = vpop.f32.mrb[8].mxu0 }
 0x13e   :  { %v205_v10 = vadd.f32 %v204_v8, %v107_v46  ;;  %v206_v11 = vpop.f32.mrb[9].mxu0 }
 0x13f   :  { %v207_v12 = vadd.f32 %v206_v11, %v111_v47  ;;  %361 = vmatprep.mubr.f32.mxu1 %v234_v7 }
 0x140   :  { %362 = vmatmul.mubr.f32.gmra.mrb[6].mxu1 %v233_v9  ;;  %v235_v15 = vmax.f32 %v205_v10, 0.0 }
 0x141   :  { %v236_v13 = vmax.f32 %v207_v12, 0.0  ;;  %v210_v14 = vpop.f32.mrb[10].mxu0 }
 0x142   :  { %v211_v16 = vadd.f32 %v210_v14, %v107_v46  ;;  %v212_v17 = vpop.f32.mrb[11].mxu0 }
 0x143   :  { %v213_v18 = vadd.f32 %v212_v17, %v111_v47  ;;  %366 = vmatprep.mubr.f32.mxu1 %v236_v13 }
 0x144   :  { %367 = vmatmul.mubr.f32.gmra.mrb[8].mxu1 %v235_v15  ;;  %v237_v21 = vmax.f32 %v211_v16, 0.0 }
 0x145   :  { %v238_v19 = vmax.f32 %v213_v18, 0.0  ;;  %v216_v20 = vpop.f32.mrb[12].mxu0 }
 0x146   :  { %v217_v22 = vadd.f32 %v216_v20, %v107_v46  ;;  %v218_v24 = vpop.f32.mrb[13].mxu0 }
 0x147   :  { %v219_v25 = vadd.f32 %v218_v24, %v111_v47  ;;  %371 = vmatprep.mubr.f32.mxu1 %v238_v19 }
 0x148   :  { %372 = vmatmul.mubr.f32.gmra.mrb[10].mxu1 %v237_v21  ;;  %v239_v35 = vmax.f32 %v217_v22, 0.0 }
 0x149   :  { %v240_v33 = vmax.f32 %v219_v25, 0.0  ;;  %v222_v34 = vpop.f32.mrb[14].mxu0 }
 0x14a   :  { %v223_v36 = vadd.f32 %v222_v34, %v107_v46  ;;  %v224_v37 = vpop.f32.mrb[15].mxu0 }
 0x14b   :  { %v225_v38 = vadd.f32 %v224_v37, %v111_v47  ;;  %376 = vmatprep.mubr.f32.mxu1 %v240_v33 }
 0x14c   :  { %377 = vmatmul.mubr.f32.gmra.mrb[12].mxu1 %v239_v35  ;;  %v241_v40 = vmax.f32 %v223_v36, 0.0 }
 0x14d   :  { %v242_v39 = vmax.f32 %v225_v38, 0.0 }
 0x14f   :  { %381 = vmatprep.mubr.f32.mxu1 %v242_v39 }
 0x150   :  { %382 = vmatmul.mubr.f32.gmra.mrb[14].mxu1 %v241_v40 }
 0x207   :  { %v454_v41 = vpop.f32.mrb[0].mxu1 }
 0x208   :  { %v455_v43 = vpop.f32.mrb[1].mxu1 }
 0x209   :  { %v456_v44 = vadd.f32 %v455_v43, %v454_v41 }
 0x20b   :  { %v349_v0 = vadd.f32 %v456_v44, %v421_v42  ;;  %v457_v45 = vpop.f32.mrb[2].mxu1 }
 0x20c   :  { %v458_v48 = vpop.f32.mrb[3].mxu1 }
 0x20d   :  { %v387_v46 = vadd.f32 %v349_v0, %v727_v23  ;;  %v459_v49 = vadd.f32 %v458_v48, %v457_v45 }
 0x20f   :  { %395 = vst [vmem:[#allocation8] sm:$0xff] %v387_v46  ;;  %v354_v47 = vadd.f32 %v459_v49, %v421_v42  ;;  %v460_v50 = vpop.f32.mrb[4].mxu1 }
 0x210   :  { %v461_v51 = vpop.f32.mrb[5].mxu1 }
 0x211   :  { %v388_v52 = vadd.f32 %v354_v47, %v731_v26  ;;  %v462_v53 = vadd.f32 %v461_v51, %v460_v50 }
 0x213   :  { %396 = vst [vmem:[#allocation8 + $0x8] sm:$0xff] %v388_v52  ;;  %v359_v54 = vadd.f32 %v462_v53, %v421_v42  ;;  %v463_v55 = vpop.f32.mrb[6].mxu1 }
 0x214   :  { %v464_v56 = vpop.f32.mrb[7].mxu1 }
 0x215   :  { %v389_v57 = vadd.f32 %v359_v54, %v735_v27  ;;  %v465_v58 = vadd.f32 %v464_v56, %v463_v55 }
 0x217   :  { %397 = vst [vmem:[#allocation8 + $0x10] sm:$0xff] %v389_v57  ;;  %v364_v59 = vadd.f32 %v465_v58, %v421_v42  ;;  %v466_v60 = vpop.f32.mrb[8].mxu1 }
 0x218   :  { %v467_v61 = vpop.f32.mrb[9].mxu1 }
 0x219   :  { %v390_v23 = vadd.f32 %v364_v59, %v739_v28  ;;  %v468_v62 = vadd.f32 %v467_v61, %v466_v60 }
 0x21b   :  { %398 = vst [vmem:[#allocation8 + $0x18] sm:$0xff] %v390_v23  ;;  %v369_v63 = vadd.f32 %v468_v62, %v421_v42  ;;  %v469_v1 = vpop.f32.mrb[10].mxu1 }
 0x21c   :  { %v470_v2 = vpop.f32.mrb[11].mxu1 }
 0x21d   :  { %v391_v26 = vadd.f32 %v369_v63, %v743_v29  ;;  %v471_v3 = vadd.f32 %v470_v2, %v469_v1 }
 0x21f   :  { %399 = vst [vmem:[#allocation8 + $0x20] sm:$0xff] %v391_v26  ;;  %v374_v4 = vadd.f32 %v471_v3, %v421_v42  ;;  %v472_v5 = vpop.f32.mrb[12].mxu1 }
 0x220   :  { %v473_v6 = vpop.f32.mrb[13].mxu1 }
 0x221   :  { %v392_v27 = vadd.f32 %v374_v4, %v747_v30  ;;  %v474_v7 = vadd.f32 %v473_v6, %v472_v5 }
 0x223   :  { %400 = vst [vmem:[#allocation8 + $0x28] sm:$0xff] %v392_v27  ;;  %v379_v8 = vadd.f32 %v474_v7, %v421_v42  ;;  %v475_v9 = vpop.f32.mrb[14].mxu1 }
 0x224   :  { %v476_v10 = vpop.f32.mrb[15].mxu1 }
 0x225   :  { %v393_v28 = vadd.f32 %v379_v8, %v751_v31  ;;  %v477_v11 = vadd.f32 %v476_v10, %v475_v9 }
 0x227   :  { %401 = vst [vmem:[#allocation8 + $0x30] sm:$0xff] %v393_v28  ;;  %v384_v12 = vadd.f32 %v477_v11, %v421_v42 }
 0x229   :  { %v394_v29 = vadd.f32 %v384_v12, %v755_v32 }
 0x22b   :  { %402 = vst [vmem:[#allocation8 + $0x38] sm:$0xff] %v394_v29 }
 0x22c   :  { %628 = shalt.err (!%p625_p0)
}
 0x22d   :  { %s629_s12 = scalar_lea.hbm %s792_s5, 1024 }
 0x22e   :  { %p630_p1 = scmp.ne.s32.totalorder %s792_s5, %s629_s12  ;;  %p633_p2 = scmp.lt.u32.totalorder %s629_s12, %s792_s5 }
 0x230   :  { %p635_p3 = pnand %p633_p2, %p630_p1 }
 0x232   :  { %638 = shalt.err (!%p635_p3)
}
 0x233   :  { %414 = dma.vmem_to_hbm [thread:$0]  %s409_s8, 1024, %s792_s5, [#allocation4], %s649_s1, %s649_s1, %s650_s17  }
 0x234   :  { %643 = dma.done.wait [#allocation4], 1024  }
 0x235   :  { %644 = vsyncadd [#allocation4], 4294966272 }
 0x236   :  { %418 = vsyncpa [#allocation3], 1 }
 0x237   :  { %419 = vsyncpa [#allocation6], 1 }
 0x238   :  { %420 = vsyncpa [#allocation4], 1 }

</bundles_post_ra>
